<compile_context>
chip_gen: v5e
topology: v5e:2x2
jax: 0.10.0
libtpu: 0.0.40
codegen_flags: <defaults>
</compile_context>

<pallas_src>
import jax
import jax.numpy as jnp
from jax.experimental import pallas as pl
from jax.experimental.pallas import tpu as pltpu


def _param_loss_kernel(out_ref, gt_ref, valid_ref, loss_ref):
    # HBM-bandwidth-bound hot path: one sub / abs / mul per vreg.
    # Compute in f32 (safe for bf16 I/O), broadcast the small mask in-register.
    diff = out_ref[...].astype(jnp.float32) - gt_ref[...].astype(jnp.float32)
    loss = jnp.abs(diff) * valid_ref[...].astype(jnp.float32)
    loss_ref[...] = loss.astype(loss_ref.dtype)


def _round_up(x, m):
    return ((x + m - 1) // m) * m


def _choose_row_block(B, D, itemsize, sub, target_bytes=1 << 20):
    """Pick a row block: >= ~1 MiB per operand, sublane-aligned, >= 2 grid steps."""
    if B <= sub:
        return B  # tiny input: single full-array block
    rb = max(sub, (target_bytes // max(D * itemsize, 1)) // sub * sub)
    rb = min(rb, _round_up(B, sub))
    if rb >= B and B > sub:
        # Keep at least 2 grid steps so "parallel" can use both v7x TensorCores.
        rb = max(sub, _round_up(pl.cdiv(B, 2), sub))
    return rb


def param_loss(param_out, param_gt, valid, *, row_block=None,
               min_pallas_elems=1 << 16):
    assert param_out.shape == param_gt.shape
    param_out = jnp.asarray(param_out)
    param_gt = jnp.asarray(param_gt)
    valid = jnp.asarray(valid)
    dtype = param_out.dtype

    # Inputs too small to amortize launch/per-step overhead, or shapes outside
    # the 2-D tiled path: let XLA fuse the three elementwise ops.
    if param_out.ndim != 2 or param_out.size < min_pallas_elems:
        return (jnp.abs(param_out - param_gt) * valid).astype(dtype)

    B, D = param_out.shape

    # Bring `valid` to a 2-D shape broadcastable against (B, D) WITHOUT
    # materializing the broadcast in HBM (torch broadcast semantics).
    if valid.ndim == 0:
        valid2 = valid.reshape(1, 1)
    elif valid.ndim == 1:
        valid2 = valid.reshape(-1, 1)          # per-row mask (B,) -> (B, 1)
    else:
        valid2 = valid
    if (valid2.ndim != 2 or valid2.shape[0] not in (1, B)
            or valid2.shape[1] not in (1, D)):
        # TODO(synk): exotic broadcast patterns fall back to fused XLA.
        return (jnp.abs(param_out - param_gt) * valid).astype(dtype)
    if valid2.dtype == jnp.bool_:
        valid2 = valid2.astype(dtype)          # avoid i1 layouts in VMEM (tiny cast)
    Bv, Dv = valid2.shape

    itemsize = jnp.dtype(dtype).itemsize
    sub = 8 if itemsize >= 4 else (16 if itemsize == 2 else 32)

    if row_block is None:
        rb = _choose_row_block(B, D, itemsize, sub)
    else:
        rb = min(int(row_block), B)
        if rb != B:
            rb = max(sub, (rb // sub) * sub)   # Mosaic: 2nd-to-last dim % sublane == 0

    grid = (pl.cdiv(B, rb),)

    # Params / output: natural layout, tiled over rows only (last dim = full D).
    param_spec = pl.BlockSpec((rb, D), lambda i: (i, 0))
    # Mask: kept at its native small shape; broadcast happens in-kernel.
    if Bv == B:
        valid_spec = pl.BlockSpec((rb, Dv), lambda i: (i, 0))
    else:
        valid_spec = pl.BlockSpec((1, Dv), lambda i: (0, 0))

    return pl.pallas_call(
        _param_loss_kernel,
        out_shape=jax.ShapeDtypeStruct((B, D), dtype),
        grid_spec=pltpu.PrefetchScalarGridSpec(
            num_scalar_prefetch=0,
            grid=grid,
            in_specs=[param_spec, param_spec, valid_spec],
            out_specs=param_spec,
        ),
        compiler_params=pltpu.CompilerParams(
            # Rows are fully independent -> shard grid steps across both TCs on v7x.
            dimension_semantics=("parallel",),
        ),
    )(param_out, param_gt, valid2)


if __name__ == "__main__":
    key = jax.random.PRNGKey(0)
    k1, k2, k3 = jax.random.split(key, 3)

    # Small case matching typical module use (batch=8, 32 pose/shape params, (B,1) mask).
    B, D = 8, 32
    param_out = jax.random.normal(k1, (B, D), dtype=jnp.float32)
    param_gt = jax.random.normal(k2, (B, D), dtype=jnp.float32)
    valid = (jax.random.uniform(k3, (B, 1)) > 0.3).astype(jnp.float32)

    loss = param_loss(param_out, param_gt, valid, min_pallas_elems=0)  # force Pallas path
    jax.block_until_ready(loss)
    ref = jnp.abs(param_out - param_gt) * valid
    assert loss.shape == (B, D)
    assert jnp.allclose(loss, ref, atol=1e-6), "mismatch vs reference (small)"

    # Larger case exercising the auto-sized, multi-step row-tiled (pipelined) path.
    B2, D2 = 1024, 72
    k4, k5, k6 = jax.random.split(jax.random.PRNGKey(1), 3)
    po2 = jax.random.normal(k4, (B2, D2), dtype=jnp.float32)
    pg2 = jax.random.normal(k5, (B2, D2), dtype=jnp.float32)
    vl2 = (jax.random.uniform(k6, (B2, 1)) > 0.5).astype(jnp.float32)

    loss2 = param_loss(po2, pg2, vl2, min_pallas_elems=0)
    jax.block_until_ready(loss2)
    ref2 = jnp.abs(po2 - pg2) * vl2
    assert loss2.shape == (B2, D2)
    assert jnp.allclose(loss2, ref2, atol=1e-6), "mismatch vs reference (tiled)"

    # Auto-dispatch sanity: tiny inputs take the fused-XLA fallback path.
    loss3 = param_loss(param_out, param_gt, valid)
    jax.block_until_ready(loss3)
    assert jnp.allclose(loss3, ref, atol=1e-6), "mismatch vs reference (fallback)"

    print("KERNEL_OK")
</pallas_src>

<mosaic_0001>
module attributes {stable_mosaic.version = 11 : i64} {
  func.func @_param_loss_kernel(%arg0: i32, %arg1: memref<8x32xf32, #tpu.memory_space<vmem>>, %arg2: memref<8x32xf32, #tpu.memory_space<vmem>>, %arg3: memref<8x1xf32, #tpu.memory_space<vmem>>, %arg4: memref<8x32xf32, #tpu.memory_space<vmem>>) attributes {dimension_semantics = [#tpu.dimension_semantics<parallel>], iteration_bounds = array<i64: 1>, scalar_prefetch = 0 : i64, scratch_operands = 0 : i64, tpu.core_type = #tpu.core_type<tc>, window_params = [{transform_indices = @transform_0, window_bounds = array<i64: 8, 32>}, {transform_indices = @transform_1, window_bounds = array<i64: 8, 32>}, {transform_indices = @transform_2, window_bounds = array<i64: 8, 1>}, {transform_indices = @transform_3, window_bounds = array<i64: 8, 32>}]} {
    %c0 = arith.constant 0 : index
    %c0_0 = arith.constant 0 : index
    %0 = vector.load %arg1[%c0, %c0_0] : memref<8x32xf32, #tpu.memory_space<vmem>>, vector<8x32xf32>
    %c0_1 = arith.constant 0 : index
    %c0_2 = arith.constant 0 : index
    %1 = vector.load %arg2[%c0_1, %c0_2] : memref<8x32xf32, #tpu.memory_space<vmem>>, vector<8x32xf32>
    %2 = arith.subf %0, %1 : vector<8x32xf32>
    %3 = math.absf %2 : vector<8x32xf32>
    %c0_3 = arith.constant 0 : index
    %c0_4 = arith.constant 0 : index
    %4 = vector.load %arg3[%c0_3, %c0_4] : memref<8x1xf32, #tpu.memory_space<vmem>>, vector<8x1xf32>
    %5 = vector.broadcast %4 : vector<8x1xf32> to vector<8x32xf32>
    %6 = arith.mulf %3, %5 : vector<8x32xf32>
    %c0_5 = arith.constant 0 : index
    %c0_6 = arith.constant 0 : index
    %7 = vector.load %arg4[%c0_5, %c0_6] : memref<8x32xf32, #tpu.memory_space<vmem>>, vector<8x32xf32>
    tpu.vector_store %arg4[%c0_5, %c0_6], %6 {strides = array<i32>} : memref<8x32xf32, #tpu.memory_space<vmem>>, vector<8x32xf32>,
    return
  }
  func.func @transform_0(%arg0: i32) -> (i32, i32) {
    %c0_i32 = arith.constant 0 : i32
    %c0_i32_0 = arith.constant 0 : i32
    return %arg0, %c0_i32 : i32, i32
  }
  func.func @transform_1(%arg0: i32) -> (i32, i32) {
    %c0_i32 = arith.constant 0 : i32
    %c0_i32_0 = arith.constant 0 : i32
    return %arg0, %c0_i32 : i32, i32
  }
  func.func @transform_2(%arg0: i32) -> (i32, i32) {
    %c0_i32 = arith.constant 0 : i32
    %c0_i32_0 = arith.constant 0 : i32
    return %arg0, %c0_i32 : i32, i32
  }
  func.func @transform_3(%arg0: i32) -> (i32, i32) {
    %c0_i32 = arith.constant 0 : i32
    %c0_i32_0 = arith.constant 0 : i32
    return %arg0, %c0_i32 : i32, i32
  }
}

</mosaic_0001>

<bundles_post_ra>
// kernel: tpu_custom_call.1
= control target key start
LH: loop header
LB: loop body
LE: loop exit
PB: predicated region body
PF: predicated region fallthrough
CT: control target
= control target key end

     0   :  { %8 = vsyncpa [#allocation3], 0  ;;  %s150_s0 = inlined_call_operand.vmem [shape: f32[8,32], index: 0, kind: input, shape index: {}]   ;;  %s151_s1 = inlined_call_operand.hbm [shape: f32[8,32], index: 1, kind: input, shape index: {}]   ;;  %s152_s2 = inlined_call_operand.vmem [shape: f32[8,1], index: 2, kind: input, shape index: {}]   ;;  %s153_s3 = inlined_call_operand.hbm [shape: f32[8,32], index: 3, kind: output, shape index: {}]  }
   0x1   :  { %9 = vsyncpa [#allocation4], 0  ;;  %s17_s14 = sshll.u32 %s151_s1, 4  ;;  %s115_s15 = smov [#allocation2]   ;;  %s18_s14 = int_to_ptr.hbm [resolvable:$true] %s17_s14 }
   0x2   :  { %s19_s16 = sshll.u32 %s115_s15, 4  ;;  %s20_s16 = int_to_ptr.vmem [resolvable:$true] %s19_s16 }
   0x3   :  { %22 = dma.hbm_to_vmem [thread:$0]  %s18_s14, 128, %s20_s16, [#allocation3]  }
   0x4   :  { %111 = dma.done.wait [#allocation3], 128  }
   0x5   :  { %112 = vsyncadd [#allocation3], 4294967168  ;;  %v116_v0 = vmov 0   ;;  %v33_v1 = vld [vmem:[%s152_s2] sm:$0xff]  ;;  %s117_s1 = smov [#allocation5]   ;;  %s49_s24 = sshll.u32 %s153_s3, 4  ;;  %s50_s24 = int_to_ptr.hbm [resolvable:$true] %s49_s24 }
   0x6   :  { %62 = vset.pattern.permute.xlu0 %v116_v0  ;;  %v29_v2 = vld [vmem:[%s150_s0] sm:$0xff]  ;;  %s47_s21 = sshll.u32 %s117_s1, 4  ;;  %vm40_vm0 = vcmask 261120   ;;  %s48_s21 = int_to_ptr.vmem [resolvable:$true] %s47_s21 }
   0x7   :  { %36 = vperm.xlu0 %62, %v33_v1   ;;  %v30_v3 = vld [vmem:[#allocation2] sm:$0xff] }
   0x8   :  { %v31_v4 = vsub.f32 %v29_v2, %v30_v3 }
   0xa   :  { %v32_v5 = vand.u32 2147483647, %v31_v4 }
  0x79   :  { %v37_v6 = vpop.permute.xlu0 %36 }
  0x7a   :  { %v39_v7 = vmul.f32 %v37_v6, %v32_v5 }
  0x7c   :  { %41 = vst.msk [vmem:[#allocation5] sm:$0xff] %vm40_vm0, %v39_v7 }
  0x7d   :  { %52 = dma.vmem_to_hbm [thread:$0]  %s48_s21, 128, %s50_s24, [#allocation4]  }
  0x7e   :  { %113 = dma.done.wait [#allocation4], 128  }
  0x7f   :  { %114 = vsyncadd [#allocation4], 4294967168 }
  0x80   :  { %57 = vsyncpa [#allocation3], 1 }
  0x81   :  { %58 = vsyncpa [#allocation4], 1 }

</bundles_post_ra>
